<compile_context>
chip_gen: v5e
topology: v5e:2x2
jax: 0.10.0
libtpu: 0.0.40
codegen_flags: <defaults>
</compile_context>

<pallas_src>
import functools

import jax
import jax.numpy as jnp
from jax.experimental import pallas as pl
from jax.experimental.pallas import tpu as pltpu


_LANE = 128          # TPU lane width; output dim is padded to this.
_ODIM = 14           # 3 position + 4 color + 3 scale + 3 rotation + 1 opacity
_ROW_TARGET = 512    # target rows per grid step (MXU-filling, DMA-friendly)


def _round_up(v, m):
    return ((v + m - 1) // m) * m


def _pick_row_block(total_rows):
    """Rows per grid step: big blocks amortize the ~0.35us per-step overhead;
    keep the grid >= 2 when there is enough work (2-TC sharding); multiple of
    16 so the bf16 output block is natively tiled."""
    half = (total_rows + 1) // 2
    return max(16, min(_ROW_TARGET, _round_up(half, 16)))


def _decoder_kernel(x_ref, tmean_ref, w1_ref, b1_ref, w2_ref, b2_ref,
                    w3_ref, b3_ref, out_ref):
    # Per-program blocks (rows = flattened batch*k):
    #   x_ref     (RB, DIN)  f32  (cast to bf16 on the VPU, hidden under MXU)
    #   tmean_ref (RB, H)    f32  (per-row repeated sequence mean)
    #   w1/w2/w3  bf16 weights; b1/b2/b3 f32 biases (w3/b3 zero-padded to 128)
    #   out_ref   (RB, 128)  bf16 (lane-dense padded slab)
    x = x_ref[...].astype(jnp.bfloat16)

    # mlp1: Linear + ReLU, then add the broadcast sequence mean.
    h1 = jnp.dot(x, w1_ref[...], preferred_element_type=jnp.float32) + b1_ref[...]
    h1 = jnp.maximum(h1, 0.0) + tmean_ref[...]

    # mlp2: Linear + ReLU + Linear.
    h2 = jnp.dot(h1.astype(jnp.bfloat16), w2_ref[...],
                 preferred_element_type=jnp.float32) + b2_ref[...]
    h2 = jnp.maximum(h2, 0.0)
    raw = jnp.dot(h2.astype(jnp.bfloat16), w3_ref[...],
                  preferred_element_type=jnp.float32) + b3_ref[...]   # (RB, 128)

    # Per-column activations (single pass, masks computed once):
    #   0-2 tanh | 3-6 sigmoid | 7-9 exp | 10-12 identity | 13 sigmoid
    #   >=14 padded (discarded by the wrapper).  The depth override of
    #   column 2 happens in the wrapper (O(B*K) scalar work).
    col = jax.lax.broadcasted_iota(jnp.int32, raw.shape, 1)
    is_exp = jnp.logical_and(col >= 7, col < 10)
    sig = jax.nn.sigmoid(raw)
    exp_val = jnp.exp(jnp.where(is_exp, raw, 0.0))   # gated: argument bounded
    act = jnp.where(col < 3, jnp.tanh(raw),
          jnp.where(col < 7, sig,
          jnp.where(col < 10, exp_val,
          jnp.where(col < 13, raw, sig))))
    out_ref[...] = act.astype(out_ref.dtype)


def _param_spec(shape):
    """Grid-invariant tensor: constant index map, single-buffered."""
    nd = len(shape)
    return pl.BlockSpec(shape, lambda i, _nd=nd: (0,) * _nd,
                        pipeline_mode=pl.Buffered(1))


def prepare_decoder_params(params):
    """One-time weight prep (call OUTSIDE the jitted path): bf16 casts and a
    zero-padded, lane-dense 128-wide last layer."""
    h = params["w1"].shape[1]
    odim = params["w3"].shape[1]
    odim_pad = _round_up(odim, _LANE)
    w3 = jnp.zeros((h, odim_pad), jnp.bfloat16)
    w3 = w3.at[:, :odim].set(params["w3"].astype(jnp.bfloat16))
    b3 = jnp.zeros((1, odim_pad), jnp.float32)
    b3 = b3.at[:, :odim].set(params["b3"].reshape(1, odim).astype(jnp.float32))
    return {
        "w1": params["w1"].astype(jnp.bfloat16),
        "b1": params["b1"].reshape(1, h).astype(jnp.float32),
        "w2": params["w2"].astype(jnp.bfloat16),
        "b2": params["b2"].reshape(1, h).astype(jnp.float32),
        "w3": w3,
        "b3": b3,
    }


@functools.partial(jax.jit, static_argnames=("k",))
def gaussian_decoder_forward(x, transformer_output, prepared, u_near, u_far,
                             weight, *, k):
    B, K, DIN = x.shape
    assert K == k
    H = prepared["w1"].shape[1]
    P = prepared["w3"].shape[1]          # padded output width (128)

    # --- tiny XLA glue hoisted out of the kernel ---------------------------
    # Sequence mean (torch .mean(dim=1, keepdim)) repeated per (batch, k) row
    # so the kernel runs one wide matmul chain over the flattened batch.
    t_mean = jnp.mean(transformer_output.astype(jnp.float32), axis=1,
                      keepdims=True)                              # (B, 1, H)
    R = B * K
    x_flat = x.reshape(R, DIN).astype(jnp.float32)
    t_flat = jnp.broadcast_to(t_mean, (B, K, H)).reshape(R, H)

    RB = _pick_row_block(R)
    grid_n = pl.cdiv(R, RB)
    if grid_n > 1 and grid_n % 2 == 1:   # even grid for the 2-TC chips (v7x)
        grid_n += 1
    R_PAD = grid_n * RB
    if R_PAD != R:
        x_flat = jnp.pad(x_flat, ((0, R_PAD - R), (0, 0)))
        t_flat = jnp.pad(t_flat, ((0, R_PAD - R), (0, 0)))

    cost = pl.CostEstimate(
        flops=2 * R_PAD * (DIN * H + H * H + H * P),
        transcendentals=3 * R_PAD * P,
        bytes_accessed=(R_PAD * DIN + R_PAD * H) * 4 + R_PAD * P * 2
                       + (DIN * H + H * H + H * P) * 2 + (2 * H + P) * 4,
    )

    out_flat = pl.pallas_call(
        _decoder_kernel,
        out_shape=jax.ShapeDtypeStruct((R_PAD, P), jnp.bfloat16),
        grid=(grid_n,),
        in_specs=[
            pl.BlockSpec((RB, DIN), lambda i: (i, 0)),   # x rows (f32, cast in-kernel)
            pl.BlockSpec((RB, H), lambda i: (i, 0)),     # per-row sequence mean
            _param_spec((DIN, H)),                       # w1 (bf16)
            _param_spec((1, H)),                         # b1
            _param_spec((H, H)),                         # w2 (bf16)
            _param_spec((1, H)),                         # b2
            _param_spec((H, P)),                         # w3 (bf16, zero-padded)
            _param_spec((1, P)),                         # b3 (zero-padded)
        ],
        out_specs=pl.BlockSpec((RB, P), lambda i: (i, 0)),
        compiler_params=pltpu.CompilerParams(
            dimension_semantics=("parallel",),
            vmem_limit_bytes=32 * 1024 * 1024,
        ),
        cost_estimate=cost,
    )(x_flat, t_flat, prepared["w1"], prepared["b1"], prepared["w2"],
      prepared["b2"], prepared["w3"], prepared["b3"])

    # Slice the padded slab once, then split the small (B, K, 14) array.
    out = out_flat[:R, :_ODIM].reshape(B, K, _ODIM).astype(jnp.float32)

    depth = (weight * u_near + (1.0 - weight) * u_far).astype(jnp.float32)  # (K,)
    position = out[:, :, 0:3]
    position = position.at[:, :, 2].set(jnp.broadcast_to(depth[None, :], (B, K)))
    color    = out[:, :, 3:7]
    scale    = out[:, :, 7:10]
    rotation = out[:, :, 10:13]
    opacity  = out[:, :, 13:14]
    return position, color, scale, rotation, opacity


def _reference_forward(x, transformer_output, params, u_near, u_far, weight, k):
    """Pure-JAX f32 mirror of the PyTorch forward for correctness checking."""
    h1 = jnp.maximum(x @ params["w1"] + params["b1"], 0.0)
    h1 = h1 + jnp.mean(transformer_output, axis=1, keepdims=True)
    h2 = jnp.maximum(h1 @ params["w2"] + params["b2"], 0.0)
    out2 = h2 @ params["w3"] + params["b3"]
    position = jnp.tanh(out2[:, :, :3])
    depth = (weight * u_near + (1.0 - weight) * u_far).reshape(1, k, 1)
    position = position.at[:, :, 2:3].set(
        jnp.broadcast_to(depth, position[:, :, 2:3].shape))
    color = jax.nn.sigmoid(out2[:, :, 3:7])
    scale = jnp.exp(out2[:, :, 7:10])
    rotation = out2[:, :, 10:13]
    opacity = jax.nn.sigmoid(out2[:, :, 13:14])
    return position, color, scale, rotation, opacity


if __name__ == "__main__":
    # Small shapes consistent with the module's forward:
    #   x:                   (B, k, input_dim)
    #   transformer_output:  (B, S, hidden_dim)
    B, K, S = 2, 8, 6
    INPUT_DIM, HIDDEN_DIM, OUTPUT_DIM = 32, 32, 14
    U_NEAR, U_FAR, W0 = 0.1, 10.0, 0.5

    key = jax.random.PRNGKey(0)
    kx, kt, k1, k2, k3 = jax.random.split(key, 5)

    x = jax.random.normal(kx, (B, K, INPUT_DIM), dtype=jnp.float32)
    transformer_output = jax.random.normal(kt, (B, S, HIDDEN_DIM),
                                           dtype=jnp.float32)

    # Deterministic synthetic parameters (Linear weights stored as [in, out]).
    params = {
        "w1": 0.05 * jax.random.normal(k1, (INPUT_DIM, HIDDEN_DIM), dtype=jnp.float32),
        "b1": jnp.zeros((1, HIDDEN_DIM), dtype=jnp.float32),
        "w2": 0.05 * jax.random.normal(k2, (HIDDEN_DIM, HIDDEN_DIM), dtype=jnp.float32),
        "b2": jnp.full((1, HIDDEN_DIM), 0.01, dtype=jnp.float32),
        "w3": 0.05 * jax.random.normal(k3, (HIDDEN_DIM, OUTPUT_DIM), dtype=jnp.float32),
        "b3": jnp.full((1, OUTPUT_DIM), 0.01, dtype=jnp.float32),
    }
    weight = jnp.full((K,), W0, dtype=jnp.float32)

    # One-time weight prep (bf16 cast + lane padding) outside the jitted path.
    prepared = prepare_decoder_params(params)

    outs = gaussian_decoder_forward(
        x, transformer_output, prepared, U_NEAR, U_FAR, weight, k=K)
    outs = jax.block_until_ready(outs)

    refs = _reference_forward(
        x, transformer_output, params, U_NEAR, U_FAR, weight, K)

    # bf16 MXU operands + bf16 output slab vs f32 reference: loosened tolerance.
    names = ("position", "color", "scale", "rotation", "opacity")
    for name, got, ref in zip(names, outs, refs):
        assert got.shape == ref.shape, (name, got.shape, ref.shape)
        assert jnp.allclose(got, ref, rtol=2e-2, atol=2e-2), name

    print("KERNEL_OK")
</pallas_src>

<mosaic_0001>
module attributes {stable_mosaic.version = 11 : i64} {
  func.func @_decoder_kernel(%arg0: i32, %arg1: memref<16x32xf32, #tpu.memory_space<vmem>>, %arg2: memref<16x32xf32, #tpu.memory_space<vmem>>, %arg3: memref<32x32xbf16, #tpu.memory_space<vmem>>, %arg4: memref<1x32xf32, #tpu.memory_space<vmem>>, %arg5: memref<32x32xbf16, #tpu.memory_space<vmem>>, %arg6: memref<1x32xf32, #tpu.memory_space<vmem>>, %arg7: memref<32x128xbf16, #tpu.memory_space<vmem>>, %arg8: memref<1x128xf32, #tpu.memory_space<vmem>>, %arg9: memref<16x128xbf16, #tpu.memory_space<vmem>>) attributes {dimension_semantics = [#tpu.dimension_semantics<parallel>], iteration_bounds = array<i64: 1>, scalar_prefetch = 0 : i64, scratch_operands = 0 : i64, tpu.core_type = #tpu.core_type<tc>, window_params = [{transform_indices = @transform_0, window_bounds = array<i64: 16, 32>}, {transform_indices = @transform_1, window_bounds = array<i64: 16, 32>}, {pipeline_mode = #tpu.pipeline_mode<synchronous>, transform_indices = @transform_2, window_bounds = array<i64: 32, 32>}, {pipeline_mode = #tpu.pipeline_mode<synchronous>, transform_indices = @transform_3, window_bounds = array<i64: 1, 32>}, {pipeline_mode = #tpu.pipeline_mode<synchronous>, transform_indices = @transform_4, window_bounds = array<i64: 32, 32>}, {pipeline_mode = #tpu.pipeline_mode<synchronous>, transform_indices = @transform_5, window_bounds = array<i64: 1, 32>}, {pipeline_mode = #tpu.pipeline_mode<synchronous>, transform_indices = @transform_6, window_bounds = array<i64: 32, 128>}, {pipeline_mode = #tpu.pipeline_mode<synchronous>, transform_indices = @transform_7, window_bounds = array<i64: 1, 128>}, {transform_indices = @transform_8, window_bounds = array<i64: 16, 128>}]} {
    %c0 = arith.constant 0 : index
    %c0_0 = arith.constant 0 : index
    %0 = vector.load %arg1[%c0, %c0_0] : memref<16x32xf32, #tpu.memory_space<vmem>>, vector<16x32xf32>
    %1 = arith.truncf %0 : vector<16x32xf32> to vector<16x32xbf16>
    %c0_1 = arith.constant 0 : index
    %c0_2 = arith.constant 0 : index
    %2 = vector.load %arg3[%c0_1, %c0_2] : memref<32x32xbf16, #tpu.memory_space<vmem>>, vector<32x32xbf16>
    %cst = arith.constant dense<0.000000e+00> : vector<16x32xf32>
    %3 = tpu.matmul %1, %2, %cst {dimension_numbers = #tpu.dot_dimension_numbers<[1], [0], [0], [1], [0, 0, 1, 1], [], []>} : vector<16x32xbf16>, vector<32x32xbf16>, vector<16x32xf32> -> vector<16x32xf32>
    %c0_3 = arith.constant 0 : index
    %c0_4 = arith.constant 0 : index
    %4 = vector.load %arg4[%c0_3, %c0_4] : memref<1x32xf32, #tpu.memory_space<vmem>>, vector<1x32xf32>
    %5 = vector.broadcast %4 : vector<1x32xf32> to vector<16x32xf32>
    %6 = arith.addf %3, %5 : vector<16x32xf32>
    %cst_5 = arith.constant 0.000000e+00 : f32
    %7 = vector.broadcast %cst_5 : f32 to vector<16x32xf32>
    %8 = arith.maximumf %6, %7 : vector<16x32xf32>
    %c0_6 = arith.constant 0 : index
    %c0_7 = arith.constant 0 : index
    %9 = vector.load %arg2[%c0_6, %c0_7] : memref<16x32xf32, #tpu.memory_space<vmem>>, vector<16x32xf32>
    %10 = arith.addf %8, %9 : vector<16x32xf32>
    %11 = arith.truncf %10 : vector<16x32xf32> to vector<16x32xbf16>
    %c0_8 = arith.constant 0 : index
    %c0_9 = arith.constant 0 : index
    %12 = vector.load %arg5[%c0_8, %c0_9] : memref<32x32xbf16, #tpu.memory_space<vmem>>, vector<32x32xbf16>
    %cst_10 = arith.constant dense<0.000000e+00> : vector<16x32xf32>
    %13 = tpu.matmul %11, %12, %cst_10 {dimension_numbers = #tpu.dot_dimension_numbers<[1], [0], [0], [1], [0, 0, 1, 1], [], []>} : vector<16x32xbf16>, vector<32x32xbf16>, vector<16x32xf32> -> vector<16x32xf32>
    %c0_11 = arith.constant 0 : index
    %c0_12 = arith.constant 0 : index
    %14 = vector.load %arg6[%c0_11, %c0_12] : memref<1x32xf32, #tpu.memory_space<vmem>>, vector<1x32xf32>
    %15 = vector.broadcast %14 : vector<1x32xf32> to vector<16x32xf32>
    %16 = arith.addf %13, %15 : vector<16x32xf32>
    %cst_13 = arith.constant 0.000000e+00 : f32
    %17 = vector.broadcast %cst_13 : f32 to vector<16x32xf32>
    %18 = arith.maximumf %16, %17 : vector<16x32xf32>
    %19 = arith.truncf %18 : vector<16x32xf32> to vector<16x32xbf16>
    %c0_14 = arith.constant 0 : index
    %c0_15 = arith.constant 0 : index
    %20 = vector.load %arg7[%c0_14, %c0_15] : memref<32x128xbf16, #tpu.memory_space<vmem>>, vector<32x128xbf16>
    %cst_16 = arith.constant dense<0.000000e+00> : vector<16x128xf32>
    %21 = tpu.matmul %19, %20, %cst_16 {dimension_numbers = #tpu.dot_dimension_numbers<[1], [0], [0], [1], [0, 0, 1, 1], [], []>} : vector<16x32xbf16>, vector<32x128xbf16>, vector<16x128xf32> -> vector<16x128xf32>
    %c0_17 = arith.constant 0 : index
    %c0_18 = arith.constant 0 : index
    %22 = vector.load %arg8[%c0_17, %c0_18] : memref<1x128xf32, #tpu.memory_space<vmem>>, vector<1x128xf32>
    %23 = vector.broadcast %22 : vector<1x128xf32> to vector<16x128xf32>
    %24 = arith.addf %21, %23 : vector<16x128xf32>
    %25 = tpu.iota {dimensions = array<i32: 1>} : vector<16x128xi32>
    %c7_i32 = arith.constant 7 : i32
    %26 = vector.broadcast %c7_i32 : i32 to vector<16x128xi32>
    %27 = arith.cmpi sge, %25, %26 : vector<16x128xi32>
    %c10_i32 = arith.constant 10 : i32
    %28 = vector.broadcast %c10_i32 : i32 to vector<16x128xi32>
    %29 = arith.cmpi slt, %25, %28 : vector<16x128xi32>
    %30 = arith.andi %27, %29 : vector<16x128xi1>
    %31 = arith.negf %24 : vector<16x128xf32>
    %32 = math.exp %31 : vector<16x128xf32>
    %cst_19 = arith.constant 1.000000e+00 : f32
    %33 = vector.broadcast %cst_19 : f32 to vector<16x128xf32>
    %34 = arith.addf %33, %32 : vector<16x128xf32>
    %35 = arith.divf %33, %34 : vector<16x128xf32>
    %cst_20 = arith.constant 0.000000e+00 : f32
    %36 = vector.broadcast %cst_20 : f32 to vector<16x128xf32>
    %37 = arith.select %30, %24, %36 : vector<16x128xi1>, vector<16x128xf32>
    %38 = math.exp %37 : vector<16x128xf32>
    %c3_i32 = arith.constant 3 : i32
    %39 = vector.broadcast %c3_i32 : i32 to vector<16x128xi32>
    %40 = arith.cmpi slt, %25, %39 : vector<16x128xi32>
    %41 = math.tanh %24 : vector<16x128xf32>
    %c7_i32_21 = arith.constant 7 : i32
    %42 = vector.broadcast %c7_i32_21 : i32 to vector<16x128xi32>
    %43 = arith.cmpi slt, %25, %42 : vector<16x128xi32>
    %c10_i32_22 = arith.constant 10 : i32
    %44 = vector.broadcast %c10_i32_22 : i32 to vector<16x128xi32>
    %45 = arith.cmpi slt, %25, %44 : vector<16x128xi32>
    %c13_i32 = arith.constant 13 : i32
    %46 = vector.broadcast %c13_i32 : i32 to vector<16x128xi32>
    %47 = arith.cmpi slt, %25, %46 : vector<16x128xi32>
    %48 = arith.select %47, %24, %35 : vector<16x128xi1>, vector<16x128xf32>
    %49 = arith.select %45, %38, %48 : vector<16x128xi1>, vector<16x128xf32>
    %50 = arith.select %43, %35, %49 : vector<16x128xi1>, vector<16x128xf32>
    %51 = arith.select %40, %41, %50 : vector<16x128xi1>, vector<16x128xf32>
    %52 = arith.truncf %51 : vector<16x128xf32> to vector<16x128xbf16>
    %c0_23 = arith.constant 0 : index
    %c0_24 = arith.constant 0 : index
    %53 = vector.load %arg9[%c0_23, %c0_24] : memref<16x128xbf16, #tpu.memory_space<vmem>>, vector<16x128xbf16>
    tpu.vector_store %arg9[%c0_23, %c0_24], %52 {strides = array<i32>} : memref<16x128xbf16, #tpu.memory_space<vmem>>, vector<16x128xbf16>,
    return
  }
  func.func @transform_0(%arg0: i32) -> (i32, i32) {
    %c0_i32 = arith.constant 0 : i32
    %c0_i32_0 = arith.constant 0 : i32
    return %arg0, %c0_i32 : i32, i32
  }
  func.func @transform_1(%arg0: i32) -> (i32, i32) {
    %c0_i32 = arith.constant 0 : i32
    %c0_i32_0 = arith.constant 0 : i32
    return %arg0, %c0_i32 : i32, i32
  }
  func.func @transform_2(%arg0: i32) -> (i32, i32) {
    %c0_i32 = arith.constant 0 : i32
    %c0_i32_0 = arith.constant 0 : i32
    %c0_i32_1 = arith.constant 0 : i32
    return %c0_i32, %c0_i32_0 : i32, i32
  }
  func.func @transform_3(%arg0: i32) -> (i32, i32) {
    %c0_i32 = arith.constant 0 : i32
    %c0_i32_0 = arith.constant 0 : i32
    %c0_i32_1 = arith.constant 0 : i32
    return %c0_i32, %c0_i32_0 : i32, i32
  }
  func.func @transform_4(%arg0: i32) -> (i32, i32) {
    %c0_i32 = arith.constant 0 : i32
    %c0_i32_0 = arith.constant 0 : i32
    %c0_i32_1 = arith.constant 0 : i32
    return %c0_i32, %c0_i32_0 : i32, i32
  }
  func.func @transform_5(%arg0: i32) -> (i32, i32) {
    %c0_i32 = arith.constant 0 : i32
    %c0_i32_0 = arith.constant 0 : i32
    %c0_i32_1 = arith.constant 0 : i32
    return %c0_i32, %c0_i32_0 : i32, i32
  }
  func.func @transform_6(%arg0: i32) -> (i32, i32) {
    %c0_i32 = arith.constant 0 : i32
    %c0_i32_0 = arith.constant 0 : i32
    %c0_i32_1 = arith.constant 0 : i32
    return %c0_i32, %c0_i32_0 : i32, i32
  }
  func.func @transform_7(%arg0: i32) -> (i32, i32) {
    %c0_i32 = arith.constant 0 : i32
    %c0_i32_0 = arith.constant 0 : i32
    %c0_i32_1 = arith.constant 0 : i32
    return %c0_i32, %c0_i32_0 : i32, i32
  }
  func.func @transform_8(%arg0: i32) -> (i32, i32) {
    %c0_i32 = arith.constant 0 : i32
    %c0_i32_0 = arith.constant 0 : i32
    return %arg0, %c0_i32 : i32, i32
  }
}

</mosaic_0001>

<bundles_post_ra>
// kernel: gaussian_decoder_forward.1
= control target key start
LH: loop header
LB: loop body
LE: loop exit
PB: predicated region body
PF: predicated region fallthrough
CT: control target
= control target key end

     0   :  { %13 = vsyncpa [#allocation3], 0  ;;  %s570_s0 = inlined_call_operand.vmem [shape: f32[16,32], index: 0, kind: input, shape index: {}]   ;;  %s571_s1 = inlined_call_operand.vmem [shape: f32[16,32], index: 1, kind: input, shape index: {}]   ;;  %s572_s2 = inlined_call_operand.vmem [shape: bf16[32,32], index: 2, kind: input, shape index: {}]   ;;  %s573_s3 = inlined_call_operand.hbm [shape: f32[1,32], index: 3, kind: input, shape index: {}]   ;;  %s574_s4 = inlined_call_operand.vmem [shape: bf16[32,32], index: 4, kind: input, shape index: {}]   ;;  %s575_s5 = inlined_call_operand.hbm [shape: f32[1,32], index: 5, kind: input, shape index: {}]   ;;  %s576_s6 = inlined_call_operand.hbm [shape: bf16[32,128], index: 6, kind: input, shape index: {}]   ;;  %s577_s7 = inlined_call_operand.hbm [shape: f32[1,128], index: 7, kind: input, shape index: {}]   ;;  %s578_s8 = inlined_call_operand.vmem [shape: bf16[16,128], index: 8, kind: output, shape index: {}]  }
   0x1   :  { %14 = vsyncpa [#allocation5], 0  ;;  %s40_s29 = sshll.u32 %s575_s5, 4  ;;  %s41_s29 = int_to_ptr.hbm [resolvable:$true] %s40_s29 }
   0x2   :  { %15 = vsyncpa [#allocation8], 0  ;;  %s452_s30 = smov [#allocation4]   ;;  %s27_s12 = sshll.u32 %s573_s3, 4  ;;  %s28_s12 = int_to_ptr.hbm [resolvable:$true] %s27_s12 }
   0x3   :  { %s42_s9 = sshll.u32 %s452_s30, 4  ;;  %s453_s13 = smov [#allocation2]   ;;  %s43_s9 = int_to_ptr.vmem [resolvable:$true] %s42_s9 }
   0x4   :  { %45 = dma.hbm_to_vmem [thread:$0]  %s41_s29, 16, %s43_s9, [#allocation5]  }
   0x5   :  { %s29_s14 = sshll.u32 %s453_s13, 4  ;;  %s50_s17 = sshll.u32 %s576_s6, 4  ;;  %s30_s14 = int_to_ptr.vmem [resolvable:$true] %s29_s14  ;;  %s51_s17 = int_to_ptr.hbm [resolvable:$true] %s50_s17 }
   0x6   :  { %32 = dma.hbm_to_vmem [thread:$0]  %s28_s12, 16, %s30_s14, [#allocation3]  }
   0x7   :  { %s454_s5 = smov [#allocation6]   ;;  %s64_s21 = sshll.u32 %s577_s7, 4  ;;  %s65_s21 = int_to_ptr.hbm [resolvable:$true] %s64_s21 }
   0x8   :  { %s52_s18 = sshll.u32 %s454_s5, 4  ;;  %s455_s22 = smov 64   ;;  %s53_s18 = int_to_ptr.vmem [resolvable:$true] %s52_s18 }
   0x9   :  { %s456_s3 = smov 4   ;;  %s457_s23 = smov [#allocation7]  }
   0xa   :  { %58 = dma.hbm_to_vmem [thread:$0]  %s51_s17, 256, %s53_s18, [#allocation5], %s455_s22, %s455_s22, %s456_s3  }
   0xb   :  { %s66_s24 = sshll.u32 %s457_s23, 4  ;;  %s67_s24 = int_to_ptr.vmem [resolvable:$true] %s66_s24 }
   0xc   :  { %69 = dma.hbm_to_vmem [thread:$0]  %s65_s21, 16, %s67_s24, [#allocation8]  }
   0xd   :  { %446 = dma.done.wait [#allocation3], 16  }
   0xe   :  { %447 = vsyncadd [#allocation3], 4294967280 }
   0xf   :  { %448 = dma.done.wait [#allocation5], 272  }
  0x10   :  { %449 = vsyncadd [#allocation5], 4294967024 }
  0x11   :  { %450 = dma.done.wait [#allocation8], 16  }
  0x12   :  { %451 = vsyncadd [#allocation8], 4294967280  ;;  %v315_v0 = vld [vmem:[%s572_s2 + $0x8] sm:$0xff]  ;;  %v314_v1 = vld [vmem:[%s572_s2] sm:$0xff]  ;;  %vm110_vm0 = vcmask 261120   ;;  %v212_v33 = vlaneseq }
  0x13   :  { %v87_v2 = vld [vmem:[%s570_s0] sm:$0xff]  ;;  %120 = vmatpush.bf16.msra.mxu0 %v315_v0  ;;  %v88_v3 = vld [vmem:[%s570_s0 + $0x8] sm:$0xff]  ;;  %v333_v29 = vld [vmem:[#allocation7] ss:$0 sm:$0xff] }
  0x14   :  { %v89_v4 = vpack.c.bf16 %v88_v3, %v87_v2  ;;  %v317_v5 = vld [vmem:[%s574_s4 + $0x8] sm:$0xff]  ;;  %v316_v6 = vld [vmem:[%s574_s4] sm:$0xff]  ;;  %v542_v37 = vand.u32 127, %v212_v33 }
  0x15   :  { %164 = vmatpush.bf16.msra.mxu1 %v317_v5  ;;  %v331_v8 = vld [vmem:[#allocation2] ss:$0 sm:$0xff]  ;;  %v131_v14 = vld [vmem:[%s571_s1 + $0x8] sm:$0xff]  ;;  %v332_v22 = vld [vmem:[#allocation4] ss:$0 sm:$0xff] }
  0x16   :  { %v130_v13 = vld [vmem:[%s571_s1] sm:$0xff]  ;;  %v319_v19 = vld [vmem:[#allocation6 + $0x8] sm:$0xff]  ;;  %vm214_vm1 = vcmp.ge.s32.totalorder %v542_v37, 7  ;;  %vm215_vm2 = vcmp.lt.s32.totalorder %v542_v37, 10  ;;  %vm265_vm8 = vcmp.lt.s32.totalorder %v542_v37, 13  ;;  %vm264_vm11 = vcmp.lt.s32.totalorder %v542_v37, 7 }
  0x17   :  { %121 = vmatpush.bf16.msra.mxu0 %v314_v1  ;;  %204 = vmatpush.bf16.msra.mxu2 %v319_v19  ;;  %v318_v20 = vld [vmem:[#allocation6] sm:$0xff]  ;;  %vm548_vm3 = vmand %vm214_vm1, %vm215_vm2  ;;  %vm261_vm14 = vcmp.lt.s32.totalorder %v542_v37, 3 }
  0x19   :  { %165 = vmatpush.bf16.msra.mxu1 %v316_v6 }
  0x1a   :  { %293 = vmatmul.msk.bf16.vlgmr.msra.gmra.mxu0 %vm110_vm0, %v89_v4 }
  0x1b   :  { %205 = vmatpush.bf16.msra.mxu2 %v318_v20 }
  0x97   :  { %v123_v7 = vpop.f32.mrf.mxu0 }
  0x98   :  { %v124_v9 = vadd.f32 %v331_v8, %v123_v7 }
  0x9a   :  { %v128_v11 = vmax.f32 %v124_v9, 0.0 }
  0x9c   :  { %v132_v16 = vadd.f32 %v130_v13, %v128_v11 }
  0x9f   :  { %v125_v10 = vpop.f32.mrf.mxu0 }
  0xa0   :  { %v126_v12 = vadd.f32 %v331_v8, %v125_v10 }
  0xa2   :  { %v129_v15 = vmax.f32 %v126_v12, 0.0 }
  0xa4   :  { %v133_v17 = vadd.f32 %v131_v14, %v129_v15 }
  0xa6   :  { %v134_v18 = vpack.c.bf16 %v133_v17, %v132_v16 }
  0xa8   :  { %302 = vmatmul.msk.bf16.vlgmr.msra.gmra.mxu1 %vm110_vm0, %v134_v18 }
 0x125   :  { %v167_v21 = vpop.f32.mrf.mxu1 }
 0x126   :  { %v168_v23 = vadd.f32 %v332_v22, %v167_v21 }
 0x128   :  { %v172_v26 = vmax.f32 %v168_v23, 0.0 }
 0x12d   :  { %v169_v24 = vpop.f32.mrf.mxu1 }
 0x12e   :  { %v170_v25 = vadd.f32 %v332_v22, %v169_v24 }
 0x130   :  { %v173_v27 = vmax.f32 %v170_v25, 0.0 }
 0x132   :  { %v174_v28 = vpack.c.bf16 %v173_v27, %v172_v26 }
 0x134   :  { %311 = vmatmul.msk.bf16.vlgmr.msra.gmra.mxu2 %vm110_vm0, %v174_v28 }
 0x1b7   :  { %v207_v30 = vpop.f32.mrf.mxu2 }
 0x1b8   :  { %v208_v31 = vadd.f32 %v333_v29, %v207_v30 }
 0x1ba   :  { %v312_v32 = vmul.f32 -1.442695, %v208_v31  ;;  %v255_v45 = vsel %vm548_vm3, %v208_v31, 0.0 }
 0x1bb   :  { %v257_v48 = vmul.f32 1.442695, %v255_v45 }
 0x1bc   :  { %334 = vpow2.f32 %v312_v32 }
 0x1bf   :  { %v209_v34 = vpop.f32.mrf.mxu2 }
 0x1c0   :  { %v210_v35 = vadd.f32 %v333_v29, %v209_v34 }
 0x1c2   :  { %v335_v36 = vpop.eup %334  ;;  %v313_v38 = vmul.f32 -1.442695, %v210_v35  ;;  %v256_v51 = vsel %vm548_vm3, %v210_v35, 0.0 }
 0x1c3   :  { %v223_v39 = vadd.f32 1.0, %v335_v36  ;;  %v259_v55 = vmul.f32 1.442695, %v256_v51 }
 0x1c4   :  { %336 = vpow2.f32 %v313_v38 }
 0x1c5   :  { %338 = vrcp.f32 %v223_v39  ;;  %v236_v47 = vand.u32 2147483648, %v223_v39  ;;  %v234_v50 = vand.u32 2147483647, %v223_v39  ;;  %vm230_vm5 = vweird.f32 %v223_v39 }
 0x1c7   :  { %v237_v54 = vor.u32 1.1754944e-38, %v236_v47  ;;  %vm235_vm7 = vcmp.eq.f32.partialorder %v234_v50, 8.507059e+37 }
 0x1ca   :  { %v337_v41 = vpop.eup %336 }
 0x1cb   :  { %v339_v42 = vpop.eup %338  ;;  %v224_v43 = vadd.f32 1.0, %v337_v41 }
 0x1cc   :  { %v226_v44 = vmul.f32 %v339_v42, %v223_v39  ;;  %vm231_vm4 = vweird.f32 %v339_v42 }
 0x1cd   :  { %340 = vrcp.f32 %v224_v43  ;;  %vm232_vm6 = vmor %vm230_vm5, %vm231_vm4  ;;  %v251_v60 = vand.u32 2147483648, %v224_v43  ;;  %v249_v63 = vand.u32 2147483647, %v224_v43  ;;  %vm245_vm10 = vweird.f32 %v224_v43 }
 0x1ce   :  { %v227_v46 = vsub.f32 1.0, %v226_v44  ;;  %342 = vpow2.f32 %v257_v48 }
 0x1cf   :  { %344 = vpow2.f32 %v259_v55  ;;  %v252_v3 = vor.u32 1.1754944e-38, %v251_v60  ;;  %vm250_vm13 = vcmp.eq.f32.partialorder %v249_v63, 8.507059e+37 }
 0x1d0   :  { %v228_v49 = vmul.f32 %v339_v42, %v227_v46  ;;  %346 = vtanh.f32 %v208_v31 }
 0x1d1   :  { %348 = vtanh.f32 %v210_v35 }
 0x1d2   :  { %v229_v52 = vadd.f32 %v339_v42, %v228_v49 }
 0x1d3   :  { %v341_v53 = vpop.eup %340 }
 0x1d4   :  { %v233_v56 = vsel %vm232_vm6, %v339_v42, %v229_v52  ;;  %v241_v57 = vmul.f32 %v341_v53, %v224_v43  ;;  %vm246_vm9 = vweird.f32 %v341_v53  ;;  %v343_v0 = vpop.eup %342 }
 0x1d5   :  { %v238_v58 = vsel %vm235_vm7, %v237_v54, %v233_v56  ;;  %vm247_vm12 = vmor %vm245_vm10, %vm246_vm9  ;;  %v345_v5 = vpop.eup %344 }
 0x1d6   :  { %v242_v59 = vsub.f32 1.0, %v241_v57  ;;  %v266_v61 = vsel %vm265_vm8, %v208_v31, %v238_v58  ;;  %v347_v9 = vpop.eup %346 }
 0x1d7   :  { %v268_v2 = vsel %vm215_vm2, %v343_v0, %v266_v61  ;;  %v349_v11 = vpop.eup %348 }
 0x1d8   :  { %v243_v62 = vmul.f32 %v341_v53, %v242_v59  ;;  %v270_v7 = vsel %vm264_vm11, %v238_v58, %v268_v2 }
 0x1d9   :  { %v272_v13 = vsel %vm261_vm14, %v347_v9, %v270_v7 }
 0x1da   :  { %v244_v1 = vadd.f32 %v341_v53, %v243_v62 }
 0x1dc   :  { %v248_v4 = vsel %vm247_vm12, %v341_v53, %v244_v1 }
 0x1dd   :  { %v253_v6 = vsel %vm250_vm13, %v252_v3, %v248_v4 }
 0x1de   :  { %v267_v8 = vsel %vm265_vm8, %v210_v35, %v253_v6 }
 0x1df   :  { %v269_v10 = vsel %vm215_vm2, %v345_v5, %v267_v8 }
 0x1e0   :  { %v271_v12 = vsel %vm264_vm11, %v253_v6, %v269_v10 }
 0x1e1   :  { %v273_v14 = vsel %vm261_vm14, %v349_v11, %v271_v12 }
 0x1e2   :  { %v323_v15 = vpack.c.bf16 %v273_v14, %v272_v13 }
 0x1e4   :  { %324 = vst [vmem:[%s578_s8] sm:$0xff] %v323_v15  }
 0x1e5   :  { %282 = vsyncpa [#allocation3], 1 }
 0x1e6   :  { %283 = vsyncpa [#allocation5], 1 }
 0x1e7   :  { %284 = vsyncpa [#allocation8], 1 }

</bundles_post_ra>
